<compile_context>
chip_gen: v6e
topology: v6e:2x2x1
jax: 0.10.0
libtpu: 0.0.40
codegen_flags: <defaults>
</compile_context>

<pallas_src>
import functools

import jax
import jax.numpy as jnp
from jax.experimental import pallas as pl
from jax.experimental.pallas import tpu as pltpu

LANE = 128
SUBLANE = 8


def _round_up(x, m):
    return ((x + m - 1) // m) * m


# ---------------------------------------------------------------------------
# Shared in-kernel pieces
# ---------------------------------------------------------------------------
def _unpack_slabs(w1_ref, whw3_ref, bias_ref):
    """Static, lane-group-aligned slices of the packed weight / bias slabs."""
    Hp = whw3_ref.shape[0]                    # padded hidden / gate width (128)
    Fp = w1_ref.shape[1]                      # padded fc1 width (512)
    wh = whw3_ref[:, 0:3 * Hp]                # (Hp, 3*Hp) bf16
    w3 = whw3_ref[:, 3 * Hp:]                 # (Hp, Ap)   bf16
    b1 = bias_ref[:, 0:Fp]                    # (1, Fp)    f32
    bi = bias_ref[:, Fp:Fp + 3 * Hp]          # (1, 3*Hp)  f32  (b_i + b_h for r,z)
    bhn = bias_ref[:, Fp + 3 * Hp:Fp + 4 * Hp]  # (1, Hp)   f32
    b3 = bias_ref[:, Fp + 4 * Hp:]            # (1, Ap)    f32 (pad cols = -1e30)
    return wh, w3, b1, bi, bhn, b3, Hp


def _gru_gates(gi, gh, h, bhn, Hp):
    """PyTorch GRUCell gate math on 128-lane-aligned gate blocks."""
    r = jax.nn.sigmoid(gi[:, 0:Hp] + gh[:, 0:Hp])
    z = jax.nn.sigmoid(gi[:, Hp:2 * Hp] + gh[:, Hp:2 * Hp])
    n = jnp.tanh(gi[:, 2 * Hp:3 * Hp] + r * (gh[:, 2 * Hp:3 * Hp] + bhn))
    return (1.0 - z) * n + z * h


def _lane_softmax(logits):
    m = jnp.max(logits, axis=-1, keepdims=True)
    e = jnp.exp(logits - m)
    # exact reciprocal: keeps row sums == 1 to ~1e-6
    return e * pl.reciprocal(jnp.sum(e, axis=-1, keepdims=True), approx=False)


# ---------------------------------------------------------------------------
# Kernels
# ---------------------------------------------------------------------------
def recurrent_net2_step_kernel(x_ref, h_ref, w1_ref, wi_ref, whw3_ref, bias_ref,
                               out_ref, hnew_ref):
    bf16, f32 = jnp.bfloat16, jnp.float32
    wh, w3, b1, bi, bhn, b3, Hp = _unpack_slabs(w1_ref, whw3_ref, bias_ref)

    h = h_ref[...]                                            # (B, Hp) f32
    # fc1 (LinearDict) + tanh.  bf16 x bf16 MXU, f32 accumulation.
    x1 = jnp.tanh(jnp.dot(x_ref[...].astype(bf16), w1_ref[...],
                          preferred_element_type=f32) + b1)
    # Fused GRU gate projections.
    gi = jnp.dot(x1.astype(bf16), wi_ref[...], preferred_element_type=f32) + bi
    gh = jnp.dot(h.astype(bf16), wh, preferred_element_type=f32)
    h_new = _gru_gates(gi, gh, h, bhn, Hp)

    # fc3 + softmax(logits / 10).  Padded action columns carry bias -1e30 so
    # their probability is exactly 0 (sliced away outside the kernel).
    logits = (jnp.dot(h_new.astype(bf16), w3, preferred_element_type=f32) + b3) * 0.1
    out_ref[...] = _lane_softmax(logits)
    hnew_ref[...] = h_new


def recurrent_net2_scan_kernel(xf_ref, h0_ref, w1_ref, wi_ref, whw3_ref, bias_ref,
                               out_ref, hfin_ref):
    """T recurrent steps in one kernel invocation (no grid).

    h-independent matmuls are batched over all T timesteps; only the small
    h @ Wh matmul + gate elementwise math stay in the sequential chain.
    """
    bf16, f32 = jnp.bfloat16, jnp.float32
    wh, w3, b1, bi, bhn, b3, Hp = _unpack_slabs(w1_ref, whw3_ref, bias_ref)
    B = h0_ref.shape[0]
    T = xf_ref.shape[0] // B

    # Batched over all T timesteps: M = T*B rows of MXU fill.
    x1 = jnp.tanh(jnp.dot(xf_ref[...].astype(bf16), w1_ref[...],
                          preferred_element_type=f32) + b1)
    gi = jnp.dot(x1.astype(bf16), wi_ref[...], preferred_element_type=f32) + bi

    # Sequential recurrence (statically unrolled; T is small, all VMEM resident).
    h = h0_ref[...]
    hs = []
    for t in range(T):
        gh = jnp.dot(h.astype(bf16), wh, preferred_element_type=f32)
        h = _gru_gates(gi[t * B:(t + 1) * B, :], gh, h, bhn, Hp)
        hs.append(h)
    hfin_ref[...] = h

    # fc3 + softmax batched over the collected hidden-state sequence.
    hall = jnp.concatenate(hs, axis=0)                        # (T*B, Hp)
    logits = (jnp.dot(hall.astype(bf16), w3, preferred_element_type=f32) + b3) * 0.1
    out_ref[...] = _lane_softmax(logits)


# ---------------------------------------------------------------------------
# Parameter packing (fuse gates, pad to 128-lane groups, bf16 weights)
# ---------------------------------------------------------------------------
def pack_params(params, hidden_size, action_size, weight_dtype=jnp.bfloat16):
    d_in, fc1 = params["w1"].shape
    H = hidden_size
    Fp = _round_up(fc1, LANE)                 # padded fc1 width
    Hp = _round_up(max(H, LANE), LANE)        # padded hidden / per-gate width
    Ap = _round_up(max(action_size, LANE), LANE)
    wd = weight_dtype

    def q(w):
        return w.astype(wd)

    w1 = jnp.zeros((d_in, Fp), wd).at[:, :fc1].set(q(params["w1"]))

    # Input-gate slab: [W_ir | W_iz | W_in], each gate padded to Hp lanes.
    wi = jnp.zeros((Fp, 3 * Hp), wd)
    wi = wi.at[:fc1, 0:H].set(q(params["w_ir"]))
    wi = wi.at[:fc1, Hp:Hp + H].set(q(params["w_iz"]))
    wi = wi.at[:fc1, 2 * Hp:2 * Hp + H].set(q(params["w_in"]))

    # Hidden-gate + fc3 slab: [W_hr | W_hz | W_hn | W_3].
    whw3 = jnp.zeros((Hp, 3 * Hp + Ap), wd)
    whw3 = whw3.at[:H, 0:H].set(q(params["w_hr"]))
    whw3 = whw3.at[:H, Hp:Hp + H].set(q(params["w_hz"]))
    whw3 = whw3.at[:H, 2 * Hp:2 * Hp + H].set(q(params["w_hn"]))
    whw3 = whw3.at[:H, 3 * Hp:3 * Hp + action_size].set(q(params["w3"]))

    # Single f32 bias slab: [b1 | b_i(+b_h for r,z) | b_hn | b3].
    bias = jnp.zeros((1, Fp + 4 * Hp + Ap), jnp.float32)
    bias = bias.at[:, :fc1].set(params["b1"])
    bias = bias.at[:, Fp:Fp + H].set(params["b_ir"] + params["b_hr"])
    bias = bias.at[:, Fp + Hp:Fp + Hp + H].set(params["b_iz"] + params["b_hz"])
    bias = bias.at[:, Fp + 2 * Hp:Fp + 2 * Hp + H].set(params["b_in"])
    bias = bias.at[:, Fp + 3 * Hp:Fp + 3 * Hp + H].set(params["b_hn"])
    # fc3 bias: padded action columns get -1e30 so softmax prob is exactly 0.
    bias = bias.at[:, Fp + 4 * Hp:].set(-1e30)
    bias = bias.at[:, Fp + 4 * Hp:Fp + 4 * Hp + action_size].set(params["b3"])
    return dict(w1=w1, wi=wi, whw3=whw3, bias=bias)


# ---------------------------------------------------------------------------
# Wrappers
# ---------------------------------------------------------------------------
def concat_state(state_dict, param_keys, batch):
    return jnp.concatenate(
        [state_dict[k].reshape(batch, -1) for k in param_keys], axis=1
    ).astype(jnp.float32)


def _vmem_spec():
    return pl.BlockSpec(memory_space=pltpu.MemorySpace.VMEM)


def recurrent_net2_forward(h, state_dict, packed, *, param_keys, action_size):
    """One _SynthesisModel.forward step (single pallas_call)."""
    B, H = h.shape
    x = concat_state(state_dict, param_keys, B)
    B_pad = _round_up(max(B, SUBLANE), SUBLANE)
    Hp = packed["whw3"].shape[0]
    Ap = packed["whw3"].shape[1] - 3 * Hp
    d_in, Fp = packed["w1"].shape

    x_p = jnp.pad(x, ((0, B_pad - B), (0, 0)))
    h_p = jnp.zeros((B_pad, Hp), jnp.float32).at[:B, :H].set(h)  # pad cols stay 0

    args = (x_p, h_p, packed["w1"], packed["wi"], packed["whw3"], packed["bias"])

    flops = 2 * B_pad * (d_in * Fp + Fp * 3 * Hp + Hp * 3 * Hp + Hp * Ap)
    transcendentals = B_pad * (Fp + 3 * Hp + Ap)
    bytes_accessed = int(
        sum(a.size * jnp.dtype(a.dtype).itemsize for a in args)
        + B_pad * (Ap + Hp) * 4)

    vmem = _vmem_spec()
    out, h_new = pl.pallas_call(
        recurrent_net2_step_kernel,
        out_shape=(jax.ShapeDtypeStruct((B_pad, Ap), jnp.float32),
                   jax.ShapeDtypeStruct((B_pad, Hp), jnp.float32)),
        in_specs=[vmem] * len(args),
        out_specs=(vmem, vmem),
        input_output_aliases={1: 1},          # h buffer -> h_new (P8)
        cost_estimate=pl.CostEstimate(flops=flops,
                                      transcendentals=transcendentals,
                                      bytes_accessed=bytes_accessed),
    )(*args)
    return out[:B, :action_size], h_new[:B, :H]


def recurrent_net2_scan(h0, x_seq, packed, *, action_size):
    """T recurrent steps in ONE pallas_call, no grid: fc1 / input-gate / fc3
    batched over all timesteps, only the h @ Wh recurrence is sequential."""
    T, B, d_in = x_seq.shape
    H = h0.shape[1]
    B_pad = _round_up(max(B, SUBLANE), SUBLANE)
    Hp = packed["whw3"].shape[0]
    Ap = packed["whw3"].shape[1] - 3 * Hp
    Fp = packed["w1"].shape[1]

    x_p = jnp.pad(x_seq, ((0, 0), (0, B_pad - B), (0, 0)))
    xf = x_p.reshape(T * B_pad, d_in)                         # flat (T*B_pad, d_in)
    h0_p = jnp.zeros((B_pad, Hp), jnp.float32).at[:B, :H].set(h0)

    args = (xf, h0_p, packed["w1"], packed["wi"], packed["whw3"], packed["bias"])
    TB = T * B_pad
    flops = (2 * TB * (d_in * Fp + Fp * 3 * Hp + Hp * Ap)
             + 2 * T * B_pad * Hp * 3 * Hp)
    transcendentals = TB * (Fp + 3 * Hp + Ap)
    bytes_accessed = int(
        sum(a.size * jnp.dtype(a.dtype).itemsize for a in args)
        + (TB * Ap + B_pad * Hp) * 4)

    vmem = _vmem_spec()
    out_flat, h_fin = pl.pallas_call(
        recurrent_net2_scan_kernel,
        out_shape=(jax.ShapeDtypeStruct((TB, Ap), jnp.float32),
                   jax.ShapeDtypeStruct((B_pad, Hp), jnp.float32)),
        in_specs=[vmem] * len(args),
        out_specs=(vmem, vmem),
        cost_estimate=pl.CostEstimate(flops=flops,
                                      transcendentals=transcendentals,
                                      bytes_accessed=bytes_accessed),
    )(*args)
    # TODO(synk): with multiple independent sequences a leading "parallel"
    # grid axis would use both v7x TensorCores; single sequence stays 1-core.
    out_seq = out_flat.reshape(T, B_pad, Ap)[:, :B, :action_size]
    return out_seq, h_fin[:B, :H]


# ---------------------------------------------------------------------------
# Pure-JAX reference (per-gate weights; same bf16 x bf16 -> f32 MXU path)
# ---------------------------------------------------------------------------
def _reference_step(x, h, params, weight_dtype):
    f32 = jnp.float32

    def mm(a, wname):
        return jnp.dot(a.astype(weight_dtype), params[wname].astype(weight_dtype),
                       preferred_element_type=f32)

    x1 = jnp.tanh(mm(x, "w1") + params["b1"])
    r = jax.nn.sigmoid(mm(x1, "w_ir") + params["b_ir"]
                       + mm(h, "w_hr") + params["b_hr"])
    z = jax.nn.sigmoid(mm(x1, "w_iz") + params["b_iz"]
                       + mm(h, "w_hz") + params["b_hz"])
    n = jnp.tanh(mm(x1, "w_in") + params["b_in"]
                 + r * (mm(h, "w_hn") + params["b_hn"]))
    h_new = (1.0 - z) * n + z * h
    logits = (mm(h_new, "w3") + params["b3"]) * 0.1
    return jax.nn.softmax(logits, axis=1), h_new


# ---------------------------------------------------------------------------
# Synthetic parameters (deterministic) matching RecurrentNet2.__init__ shapes
# ---------------------------------------------------------------------------
def make_params(key, input_size_dict, fc1_dim, hidden_size, action_size):
    sizes = []
    for _, s in input_size_dict.items():
        sizes.append(int(s) if isinstance(s, int) else int(jnp.prod(jnp.array(s))))
    d_in = sum(sizes)

    keys = jax.random.split(key, 16)
    gru_bound = 1.0 / (hidden_size ** 0.5)

    def nrm(k, shape, scale):
        return jax.random.normal(k, shape, dtype=jnp.float32) * scale

    def uni(k, shape, bound):
        return jax.random.uniform(k, shape, dtype=jnp.float32,
                                  minval=-bound, maxval=bound)

    params = {
        "w1": nrm(keys[0], (d_in, fc1_dim), 2.0 / (fc1_dim ** 0.5)),
        "b1": jnp.zeros((1, fc1_dim), jnp.float32),
        "w_ir": nrm(keys[1], (fc1_dim, hidden_size), 1.0 / (fc1_dim ** 0.5)),
        "w_iz": nrm(keys[2], (fc1_dim, hidden_size), 1.0 / (fc1_dim ** 0.5)),
        "w_in": nrm(keys[3], (fc1_dim, hidden_size), 1.0 / (fc1_dim ** 0.5)),
        "w_hr": nrm(keys[4], (hidden_size, hidden_size), 1.0 / (hidden_size ** 0.5)),
        "w_hz": nrm(keys[5], (hidden_size, hidden_size), 1.0 / (hidden_size ** 0.5)),
        "w_hn": nrm(keys[6], (hidden_size, hidden_size), 1.0 / (hidden_size ** 0.5)),
        "b_ir": uni(keys[7], (1, hidden_size), gru_bound),
        "b_iz": uni(keys[8], (1, hidden_size), gru_bound),
        "b_in": uni(keys[9], (1, hidden_size), gru_bound),
        "b_hr": uni(keys[10], (1, hidden_size), gru_bound),
        "b_hz": uni(keys[11], (1, hidden_size), gru_bound),
        "b_hn": uni(keys[12], (1, hidden_size), gru_bound),
        "w3": nrm(keys[13], (hidden_size, action_size), 1.0 / (hidden_size ** 0.5)),
        "b3": jnp.zeros((1, action_size), jnp.float32),
    }
    # TODO(synk): nn.init.orthogonal_ on fc1 / GRU weights is replaced by scaled
    # Gaussian init (deterministic); forward-pass semantics are unaffected.
    return params, d_in


if __name__ == "__main__":
    key = jax.random.PRNGKey(0)

    batch = 2
    hidden_size = 32
    fc1_dim = 500
    input_size_dict = {"obs": (4, 4), "goal": 16}     # flattens to 16 + 16 = 32
    action_types = ["up", "down", "left", "right"]
    action_size = len(action_types)
    seq_len = 8
    weight_dtype = jnp.bfloat16   # MXU consumes bf16 x bf16, f32 accumulation

    k_par, k_obs, k_goal, k_h, k_seq = jax.random.split(key, 5)
    params, d_in = make_params(k_par, input_size_dict, fc1_dim,
                               hidden_size, action_size)
    packed = pack_params(params, hidden_size, action_size, weight_dtype)

    state_dict = {
        "obs": jax.random.normal(k_obs, (batch, 4, 4), dtype=jnp.float32),
        "goal": jax.random.normal(k_goal, (batch, 16), dtype=jnp.float32),
    }
    h0 = jax.random.normal(k_h, (batch, hidden_size), dtype=jnp.float32)
    param_keys = tuple(input_size_dict.keys())

    # ---- single _SynthesisModel.forward step -------------------------------
    fwd = jax.jit(functools.partial(recurrent_net2_forward,
                                    param_keys=param_keys,
                                    action_size=action_size))
    out, h_new = fwd(h0, state_dict, packed)
    jax.block_until_ready((out, h_new))

    x0 = concat_state(state_dict, param_keys, batch)
    ref_out, ref_h = _reference_step(x0, h0, params, weight_dtype)
    assert out.shape == (batch, action_size) and h_new.shape == (batch, hidden_size)
    assert jnp.allclose(out, ref_out, atol=2e-3, rtol=2e-3)
    assert jnp.allclose(h_new, ref_h, atol=2e-3, rtol=2e-3)
    assert jnp.allclose(jnp.sum(out, axis=1), 1.0, atol=1e-5)

    # ---- T recurrent steps fused into ONE kernel (no grid) -----------------
    x_seq = jax.random.normal(k_seq, (seq_len, batch, d_in), dtype=jnp.float32)
    scan = jax.jit(functools.partial(recurrent_net2_scan,
                                     action_size=action_size))
    out_seq, h_last = scan(h0, x_seq, packed)
    jax.block_until_ready((out_seq, h_last))

    h_ref = h0
    ref_outs = []
    for t in range(seq_len):
        o, h_ref = _reference_step(x_seq[t], h_ref, params, weight_dtype)
        ref_outs.append(o)
    ref_seq = jnp.stack(ref_outs)
    assert out_seq.shape == (seq_len, batch, action_size)
    assert h_last.shape == (batch, hidden_size)
    assert jnp.allclose(out_seq, ref_seq, atol=1e-2, rtol=1e-2)
    assert jnp.allclose(h_last, h_ref, atol=1e-2, rtol=1e-2)
    assert jnp.allclose(jnp.sum(out_seq, axis=-1), 1.0, atol=1e-5)

    print("KERNEL_OK")
</pallas_src>

<mosaic_0001>
module attributes {stable_mosaic.version = 11 : i64} {
  func.func @recurrent_net2_step_kernel(%arg0: memref<8x32xf32, #tpu.memory_space<vmem>>, %arg1: memref<8x128xf32, #tpu.memory_space<vmem>>, %arg2: memref<32x512xbf16, #tpu.memory_space<vmem>>, %arg3: memref<512x384xbf16, #tpu.memory_space<vmem>>, %arg4: memref<128x512xbf16, #tpu.memory_space<vmem>>, %arg5: memref<1x1152xf32, #tpu.memory_space<vmem>>, %arg6: memref<8x128xf32, #tpu.memory_space<vmem>>, %arg7: memref<8x128xf32, #tpu.memory_space<vmem>>) attributes {dimension_semantics = [], scalar_prefetch = 0 : i64, scratch_operands = 0 : i64, tpu.core_type = #tpu.core_type<tc>} {
    %c0 = arith.constant 0 : index
    %c0_0 = arith.constant 0 : index
    %0 = vector.load %arg4[%c0, %c0_0] : memref<128x512xbf16, #tpu.memory_space<vmem>>, vector<128x384xbf16>
    %c0_1 = arith.constant 0 : index
    %c384 = arith.constant 384 : index
    %1 = vector.load %arg4[%c0_1, %c384] : memref<128x512xbf16, #tpu.memory_space<vmem>>, vector<128x128xbf16>
    %c0_2 = arith.constant 0 : index
    %c0_3 = arith.constant 0 : index
    %2 = vector.load %arg5[%c0_2, %c0_3] : memref<1x1152xf32, #tpu.memory_space<vmem>>, vector<1x512xf32>
    %c0_4 = arith.constant 0 : index
    %c512 = arith.constant 512 : index
    %3 = vector.load %arg5[%c0_4, %c512] : memref<1x1152xf32, #tpu.memory_space<vmem>>, vector<1x384xf32>
    %c0_5 = arith.constant 0 : index
    %c896 = arith.constant 896 : index
    %4 = vector.load %arg5[%c0_5, %c896] : memref<1x1152xf32, #tpu.memory_space<vmem>>, vector<1x128xf32>
    %c0_6 = arith.constant 0 : index
    %c1024 = arith.constant 1024 : index
    %5 = vector.load %arg5[%c0_6, %c1024] : memref<1x1152xf32, #tpu.memory_space<vmem>>, vector<1x128xf32>
    %c0_7 = arith.constant 0 : index
    %c0_8 = arith.constant 0 : index
    %6 = vector.load %arg1[%c0_7, %c0_8] : memref<8x128xf32, #tpu.memory_space<vmem>>, vector<8x128xf32>
    %c0_9 = arith.constant 0 : index
    %c0_10 = arith.constant 0 : index
    %7 = vector.load %arg0[%c0_9, %c0_10] : memref<8x32xf32, #tpu.memory_space<vmem>>, vector<8x32xf32>
    %8 = arith.truncf %7 : vector<8x32xf32> to vector<8x32xbf16>
    %c0_11 = arith.constant 0 : index
    %c0_12 = arith.constant 0 : index
    %9 = vector.load %arg2[%c0_11, %c0_12] : memref<32x512xbf16, #tpu.memory_space<vmem>>, vector<32x512xbf16>
    %cst = arith.constant dense<0.000000e+00> : vector<8x512xf32>
    %10 = tpu.matmul %8, %9, %cst {dimension_numbers = #tpu.dot_dimension_numbers<[1], [0], [0], [1], [0, 0, 1, 1], [], []>} : vector<8x32xbf16>, vector<32x512xbf16>, vector<8x512xf32> -> vector<8x512xf32>
    %11 = vector.broadcast %2 : vector<1x512xf32> to vector<8x512xf32>
    %12 = arith.addf %10, %11 : vector<8x512xf32>
    %13 = math.tanh %12 : vector<8x512xf32>
    %14 = arith.truncf %13 : vector<8x512xf32> to vector<8x512xbf16>
    %c0_13 = arith.constant 0 : index
    %c0_14 = arith.constant 0 : index
    %15 = vector.load %arg3[%c0_13, %c0_14] : memref<512x384xbf16, #tpu.memory_space<vmem>>, vector<512x384xbf16>
    %cst_15 = arith.constant dense<0.000000e+00> : vector<8x384xf32>
    %16 = tpu.matmul %14, %15, %cst_15 {dimension_numbers = #tpu.dot_dimension_numbers<[1], [0], [0], [1], [0, 0, 1, 1], [], []>} : vector<8x512xbf16>, vector<512x384xbf16>, vector<8x384xf32> -> vector<8x384xf32>
    %17 = vector.broadcast %3 : vector<1x384xf32> to vector<8x384xf32>
    %18 = arith.addf %16, %17 : vector<8x384xf32>
    %19 = arith.truncf %6 : vector<8x128xf32> to vector<8x128xbf16>
    %cst_16 = arith.constant dense<0.000000e+00> : vector<8x384xf32>
    %20 = tpu.matmul %19, %0, %cst_16 {dimension_numbers = #tpu.dot_dimension_numbers<[1], [0], [0], [1], [0, 0, 1, 1], [], []>} : vector<8x128xbf16>, vector<128x384xbf16>, vector<8x384xf32> -> vector<8x384xf32>
    %21 = vector.extract_strided_slice %18 {offsets = [0, 0], sizes = [8, 128], strides = [1, 1]} : vector<8x384xf32> to vector<8x128xf32>
    %22 = vector.extract_strided_slice %20 {offsets = [0, 0], sizes = [8, 128], strides = [1, 1]} : vector<8x384xf32> to vector<8x128xf32>
    %23 = arith.addf %21, %22 : vector<8x128xf32>
    %24 = arith.negf %23 : vector<8x128xf32>
    %25 = math.exp %24 : vector<8x128xf32>
    %cst_17 = arith.constant 1.000000e+00 : f32
    %26 = vector.broadcast %cst_17 : f32 to vector<8x128xf32>
    %27 = arith.addf %26, %25 : vector<8x128xf32>
    %28 = arith.divf %26, %27 : vector<8x128xf32>
    %29 = vector.extract_strided_slice %18 {offsets = [0, 128], sizes = [8, 128], strides = [1, 1]} : vector<8x384xf32> to vector<8x128xf32>
    %30 = vector.extract_strided_slice %20 {offsets = [0, 128], sizes = [8, 128], strides = [1, 1]} : vector<8x384xf32> to vector<8x128xf32>
    %31 = arith.addf %29, %30 : vector<8x128xf32>
    %32 = arith.negf %31 : vector<8x128xf32>
    %33 = math.exp %32 : vector<8x128xf32>
    %cst_18 = arith.constant 1.000000e+00 : f32
    %34 = vector.broadcast %cst_18 : f32 to vector<8x128xf32>
    %35 = arith.addf %34, %33 : vector<8x128xf32>
    %36 = arith.divf %34, %35 : vector<8x128xf32>
    %37 = vector.extract_strided_slice %18 {offsets = [0, 256], sizes = [8, 128], strides = [1, 1]} : vector<8x384xf32> to vector<8x128xf32>
    %38 = vector.extract_strided_slice %20 {offsets = [0, 256], sizes = [8, 128], strides = [1, 1]} : vector<8x384xf32> to vector<8x128xf32>
    %39 = vector.broadcast %4 : vector<1x128xf32> to vector<8x128xf32>
    %40 = arith.addf %38, %39 : vector<8x128xf32>
    %41 = arith.mulf %28, %40 : vector<8x128xf32>
    %42 = arith.addf %37, %41 : vector<8x128xf32>
    %43 = math.tanh %42 : vector<8x128xf32>
    %cst_19 = arith.constant 1.000000e+00 : f32
    %44 = vector.broadcast %cst_19 : f32 to vector<8x128xf32>
    %45 = arith.subf %44, %36 : vector<8x128xf32>
    %46 = arith.mulf %45, %43 : vector<8x128xf32>
    %47 = arith.mulf %36, %6 : vector<8x128xf32>
    %48 = arith.addf %46, %47 : vector<8x128xf32>
    %49 = arith.truncf %48 : vector<8x128xf32> to vector<8x128xbf16>
    %cst_20 = arith.constant dense<0.000000e+00> : vector<8x128xf32>
    %50 = tpu.matmul %49, %1, %cst_20 {dimension_numbers = #tpu.dot_dimension_numbers<[1], [0], [0], [1], [0, 0, 1, 1], [], []>} : vector<8x128xbf16>, vector<128x128xbf16>, vector<8x128xf32> -> vector<8x128xf32>
    %51 = vector.broadcast %5 : vector<1x128xf32> to vector<8x128xf32>
    %52 = arith.addf %50, %51 : vector<8x128xf32>
    %cst_21 = arith.constant 1.000000e-01 : f32
    %53 = vector.broadcast %cst_21 : f32 to vector<8x128xf32>
    %54 = arith.mulf %52, %53 : vector<8x128xf32>
    %cst_22 = arith.constant dense<0xFF800000> : vector<8xf32>
    %55 = vector.multi_reduction <maximumf>, %54, %cst_22 [1] : vector<8x128xf32> to vector<8xf32>
    %56 = vector.shape_cast %55 : vector<8xf32> to vector<8x1xf32>
    %57 = vector.broadcast %56 : vector<8x1xf32> to vector<8x128xf32>
    %58 = arith.subf %54, %57 : vector<8x128xf32>
    %59 = math.exp %58 : vector<8x128xf32>
    %cst_23 = arith.constant dense<0.000000e+00> : vector<8xf32>
    %60 = vector.multi_reduction <add>, %59, %cst_23 [1] : vector<8x128xf32> to vector<8xf32>
    %61 = vector.shape_cast %60 : vector<8xf32> to vector<8x1xf32>
    %62 = tpu.reciprocal %61 : vector<8x1xf32> -> vector<8x1xf32>
    %63 = vector.broadcast %62 : vector<8x1xf32> to vector<8x128xf32>
    %64 = arith.mulf %59, %63 : vector<8x128xf32>
    %c0_24 = arith.constant 0 : index
    %c0_25 = arith.constant 0 : index
    %65 = vector.load %arg6[%c0_24, %c0_25] : memref<8x128xf32, #tpu.memory_space<vmem>>, vector<8x128xf32>
    tpu.vector_store %arg6[%c0_24, %c0_25], %64 {strides = array<i32>} : memref<8x128xf32, #tpu.memory_space<vmem>>, vector<8x128xf32>,
    %c0_26 = arith.constant 0 : index
    %c0_27 = arith.constant 0 : index
    %66 = vector.load %arg7[%c0_26, %c0_27] : memref<8x128xf32, #tpu.memory_space<vmem>>, vector<8x128xf32>
    tpu.vector_store %arg7[%c0_26, %c0_27], %48 {strides = array<i32>} : memref<8x128xf32, #tpu.memory_space<vmem>>, vector<8x128xf32>,
    return
  }
}

</mosaic_0001>

<bundles_post_ra>
// kernel: recurrent_net2_forward.1
= control target key start
LH: loop header
LB: loop body
LE: loop exit
PB: predicated region body
PF: predicated region fallthrough
CT: control target
= control target key end

     0   :  { %13 = vsyncpa [#allocation3], 0  ;;  %s2117_s0 = inlined_call_operand.vmem [shape: f32[8,32], index: 0, kind: input, shape index: {}]   ;;  %s2118_s1 = inlined_call_operand.vmem [shape: f32[8,128], index: 1, kind: input, shape index: {}, may-alias: {1,7}]   ;;  %s2119_s2 = inlined_call_operand.hbm [shape: bf16[32,512], index: 2, kind: input, shape index: {}]   ;;  %s2120_s3 = inlined_call_operand.hbm [shape: bf16[512,384], index: 3, kind: input, shape index: {}]   ;;  %s2121_s4 = inlined_call_operand.hbm [shape: bf16[128,512], index: 4, kind: input, shape index: {}]   ;;  %s2122_s5 = inlined_call_operand.vmem [shape: f32[1,1152], index: 5, kind: input, shape index: {}]   ;;  %s2123_s6 = inlined_call_operand.vmem [shape: f32[8,128], index: 6, kind: output, shape index: {0}]   ;;  %s2124_s7 = inlined_call_operand.vmem [shape: f32[8,128], index: 7, kind: output, shape index: {1}, may-alias: {1,7}]  }
   0x1   :  { %14 = vsyncpa [#allocation5], 0  ;;  %s1978_s24 = smov [#allocation4]  }
   0x2   :  { %s36_s25 = sshll.u32 %s1978_s24, 4  ;;  %s37_s25 = int_to_ptr.vmem [resolvable:$true] %s36_s25 }
   0x3   :  { %s1922_s26 = scalar_lea.vmem %s37_s25, 12288  ;;  %p1927_p1 = scmp.lt.s32.totalorder %s37_s25, %s37_s25 }
   0x4   :  { %p1923_p0 = scmp.ne.s32.totalorder %s37_s25, %s1922_s26  ;;  %p1928_p2 = scmp.lt.s32.totalorder %s1922_s26, %s1922_s26 }
   0x6   :  { %p1929_p3 = por %p1928_p2, %p1927_p1 }
   0x8   :  { %p1930_p4 = pnand %p1929_p3, %p1923_p0 }
   0xa   :  { %1933 = shalt.err (!%p1930_p4)
}
   0xb   :  { %s1979_s27 = smov 192   ;;  %s1980_s28 = smov 12  }
   0xc   :  { %42 = dma.hbm_to_vmem [thread:$0]  %s2120_s3, 12288, %s37_s25, [#allocation5], %s1979_s27, %s1979_s27, %s1980_s28  }
   0xd   :  { %s1981_s8 = smov [#allocation2]  }
   0xe   :  { %s24_s9 = sshll.u32 %s1981_s8, 4  ;;  %s25_s9 = int_to_ptr.vmem [resolvable:$true] %s24_s9 }
   0xf   :  { %s1942_s10 = scalar_lea.vmem %s25_s9, 1024  ;;  %p1947_p6 = scmp.lt.s32.totalorder %s25_s9, %s25_s9 }
  0x10   :  { %p1943_p5 = scmp.ne.s32.totalorder %s25_s9, %s1942_s10  ;;  %p1948_p7 = scmp.lt.s32.totalorder %s1942_s10, %s1942_s10 }
  0x12   :  { %p1949_p8 = por %p1948_p7, %p1947_p6 }
  0x14   :  { %p1950_p9 = pnand %p1949_p8, %p1943_p5 }
  0x16   :  { %1953 = shalt.err (!%p1950_p9)
}
  0x17   :  { %s1982_s11 = smov 256   ;;  %s1983_s12 = smov 16  }
  0x18   :  { %30 = dma.hbm_to_vmem [thread:$0]  %s2119_s2, 1024, %s25_s9, [#allocation3], %s1982_s11, %s1982_s11, %s1983_s12  }
  0x19   :  { %s1984_s15 = smov [#allocation6]  }
  0x1a   :  { %s48_s16 = sshll.u32 %s1984_s15, 4  ;;  %s49_s16 = int_to_ptr.vmem [resolvable:$true] %s48_s16 }
  0x1b   :  { %s1962_s3 = scalar_lea.vmem %s49_s16, 4096  ;;  %p1967_p11 = scmp.lt.s32.totalorder %s49_s16, %s49_s16 }
  0x1c   :  { %p1963_p10 = scmp.ne.s32.totalorder %s49_s16, %s1962_s3  ;;  %p1968_p12 = scmp.lt.s32.totalorder %s1962_s3, %s1962_s3 }
  0x1e   :  { %p1969_p13 = por %p1968_p12, %p1967_p11 }
  0x20   :  { %p1970_p0 = pnand %p1969_p13, %p1963_p10 }
  0x22   :  { %1973 = shalt.err (!%p1970_p0)
}
  0x23   :  { %54 = dma.hbm_to_vmem [thread:$0]  %s2121_s4, 4096, %s49_s16, [#allocation5], %s1982_s11, %s1982_s11, %s1983_s12  }
  0x24   :  { %1974 = dma.done.wait [#allocation3], 1024  }
  0x25   :  { %1975 = vsyncadd [#allocation3], 4294966272 }
  0x26   :  { %1976 = dma.done.wait [#allocation5], 16384  }
  0x27   :  { %1977 = vsyncadd [#allocation5], 4294950912  ;;  %v1985_v0 = vmov 0   ;;  %v1712_v1 = vld [vmem:[#allocation2 + $0x24] ss:$16 sps:$4 sm:$0xff]   ;;  %vm191_vm0 = vcmask 261120  }
  0x28   :  { %227 = vmatprep.mubr.bf16.mxu1 %v1985_v0  ;;  %v1714_v2 = vld [vmem:[#allocation2 + $0x20] ss:$16 sps:$4 sm:$0xff]   ;;  %207 = vmatprep.subr.bf16.mxu1 %v1712_v1  ;;  %v1715_v3 = vld [vmem:[#allocation2 + $0x4] ss:$16 sps:$4 sm:$0xff]   ;;  %v1720_v6 = vld [vmem:[#allocation2 + $0x2c] ss:$16 sps:$4 sm:$0xff]  }
  0x29   :  { %v1717_v4 = vld [vmem:[#allocation2] ss:$16 sps:$4 sm:$0xff]   ;;  %208 = vmatpush1.bf16.msra.mxu1 %v1714_v2  ;;  %v1718_v7 = vld [vmem:[#allocation2 + $0x28] ss:$16 sps:$4 sm:$0xff]   ;;  %v1723_v12 = vld [vmem:[#allocation2 + $0xc] ss:$16 sps:$4 sm:$0xff]  }
  0x2a   :  { %v120_v5 = vld [vmem:[%s2117_s0] sm:$0xff]  ;;  %209 = vmatprep.subr.bf16.mxu1 %v1715_v3  ;;  %v1724_v9 = vld [vmem:[#allocation4 + $0xac] ss:$12 sps:$4 sm:$0xff]   ;;  %v1726_v10 = vld [vmem:[#allocation4 + $0xa8] ss:$12 sps:$4 sm:$0xff]   ;;  %vm1987_vm1 = vmmov 0  }
  0x2b   :  { %v121_v8 = vpack.c.bf16 %v120_v5, %v120_v5  ;;  %v1727_v11 = vld [vmem:[#allocation4 + $0x94] ss:$12 sps:$4 sm:$0xff]   ;;  %941 = vmatprep.subr.bf16.mxu0 %v1724_v9  ;;  %v1729_v13 = vld [vmem:[#allocation4 + $0x90] ss:$12 sps:$4 sm:$0xff]   ;;  %v1721_v15 = vld [vmem:[#allocation2 + $0x8] ss:$16 sps:$4 sm:$0xff]  }
  0x2c   :  { %942 = vmatpush1.bf16.msra.mxu0 %v1726_v10  ;;  %v1730_v14 = vld [vmem:[#allocation4 + $0x7c] ss:$12 sps:$4 sm:$0xff]   ;;  %v1734_v16 = vld [vmem:[#allocation4 + $0x22c] ss:$12 sps:$4 sm:$0xff]   ;;  %v1736_v18 = vld [vmem:[#allocation4 + $0x64] ss:$12 sps:$4 sm:$0xff]  }
  0x2d   :  { %210 = vmatpush1.bf16.msra.mxu1 %v1717_v4  ;;  %943 = vmatprep.subr.bf16.mxu0 %v1727_v11  ;;  %v1735_v17 = vld [vmem:[#allocation4 + $0x78] ss:$12 sps:$4 sm:$0xff]   ;;  %v1732_v19 = vld [vmem:[#allocation4 + $0x228] ss:$12 sps:$4 sm:$0xff]   ;;  %v1741_v21 = vld [vmem:[#allocation4 + $0x60] ss:$12 sps:$4 sm:$0xff]  }
  0x2e   :  { %248 = vmatprep.subr.bf16.mxu1 %v1720_v6  ;;  %v1740_v20 = vld [vmem:[#allocation4 + $0x214] ss:$12 sps:$4 sm:$0xff]   ;;  %v1742_v22 = vld [vmem:[#allocation4 + $0x4c] ss:$12 sps:$4 sm:$0xff]   ;;  %v1738_v23 = vld [vmem:[#allocation4 + $0x210] ss:$12 sps:$4 sm:$0xff]  }
  0x2f   :  { %v1746_v24 = vld [vmem:[#allocation4 + $0x1fc] ss:$12 sps:$4 sm:$0xff]   ;;  %v1748_v26 = vld [vmem:[#allocation4 + $0x34] ss:$12 sps:$4 sm:$0xff]   ;;  %v1744_v27 = vld [vmem:[#allocation4 + $0x1f8] ss:$12 sps:$4 sm:$0xff]  }
  0x30   :  { %1466 = vmatmul.mubr.msk.bf16.vlgmr.msra.gmra.mxu1 %vm191_vm0, %v121_v8  ;;  %944 = vmatpush1.bf16.msra.mxu0 %v1729_v13  ;;  %v1747_v25 = vld [vmem:[#allocation4 + $0x48] ss:$12 sps:$4 sm:$0xff]   ;;  %v1752_v28 = vld [vmem:[#allocation4 + $0x1e4] ss:$12 sps:$4 sm:$0xff]   ;;  %v1750_v31 = vld [vmem:[#allocation4 + $0x1e0] ss:$12 sps:$4 sm:$0xff]  }
  0x31   :  { %249 = vmatpush1.bf16.msra.mxu1 %v1718_v7  ;;  %268 = vmatprep.mubr.bf16.mxu1 %v1985_v0  ;;  %v1753_v29 = vld [vmem:[#allocation4 + $0x30] ss:$12 sps:$4 sm:$0xff]   ;;  %v1758_v32 = vld [vmem:[#allocation4 + $0x1cc] ss:$12 sps:$4 sm:$0xff]   ;;  %v1756_v35 = vld [vmem:[#allocation4 + $0x1c8] ss:$12 sps:$4 sm:$0xff]  }
  0x32   :  { %250 = vmatprep.subr.bf16.mxu1 %v1723_v12  ;;  %945 = vmatprep.subr.bf16.mxu0 %v1730_v14  ;;  %v1754_v30 = vld [vmem:[#allocation4 + $0x1c] ss:$12 sps:$4 sm:$0xff]   ;;  %v1759_v33 = vld [vmem:[#allocation4 + $0x18] ss:$12 sps:$4 sm:$0xff]   ;;  %v1764_v36 = vld [vmem:[#allocation4 + $0x1b4] ss:$12 sps:$4 sm:$0xff]   ;;  %v131_v14 = vlaneseq }
  0x33   :  { %v1760_v34 = vld [vmem:[#allocation4 + $0x4] ss:$12 sps:$4 sm:$0xff]   ;;  %v1765_v37 = vld [vmem:[#allocation4] ss:$12 sps:$4 sm:$0xff]   ;;  %v1770_v40 = vld [vmem:[#allocation4 + $0x19c] ss:$12 sps:$4 sm:$0xff]  }
  0x34   :  { %946 = vmatpush1.bf16.msra.mxu0 %v1735_v17  ;;  %v1766_v38 = vld [vmem:[#allocation4 + $0x16c] ss:$12 sps:$4 sm:$0xff]   ;;  %v1762_v39 = vld [vmem:[#allocation4 + $0x1b0] ss:$12 sps:$4 sm:$0xff]   ;;  %v1771_v41 = vld [vmem:[#allocation4 + $0x168] ss:$12 sps:$4 sm:$0xff]  }
  0x35   :  { %251 = vmatpush1.bf16.msra.mxu1 %v1721_v15  ;;  %947 = vmatprep.subr.bf16.mxu0 %v1736_v18  ;;  %v1772_v42 = vld [vmem:[#allocation4 + $0x154] ss:$12 sps:$4 sm:$0xff]   ;;  %v1768_v43 = vld [vmem:[#allocation4 + $0x198] ss:$12 sps:$4 sm:$0xff]   ;;  %v1777_v45 = vld [vmem:[#allocation4 + $0x150] ss:$12 sps:$4 sm:$0xff]  }
  0x36   :  { %982 = vmatprep.subr.bf16.mxu1 %v1734_v16  ;;  %v1776_v44 = vld [vmem:[#allocation4 + $0x184] ss:$12 sps:$4 sm:$0xff]   ;;  %v1778_v46 = vld [vmem:[#allocation4 + $0x13c] ss:$12 sps:$4 sm:$0xff]   ;;  %v1774_v47 = vld [vmem:[#allocation4 + $0x180] ss:$12 sps:$4 sm:$0xff]  }
  0x37   :  { %v1782_v48 = vld [vmem:[#allocation4 + $0x2ec] ss:$12 sps:$4 sm:$0xff]   ;;  %v1780_v50 = vld [vmem:[#allocation4 + $0x2e8] ss:$12 sps:$4 sm:$0xff]   ;;  %v1784_v51 = vld [vmem:[#allocation4 + $0x124] ss:$12 sps:$4 sm:$0xff]  }
  0x38   :  { %1467 = vmatmul.mubr.msk.bf16.vlgmr.msra.gmra.mxu1 %vm191_vm0, %v121_v8  ;;  %948 = vmatpush1.bf16.msra.mxu0 %v1741_v21  ;;  %v1783_v49 = vld [vmem:[#allocation4 + $0x138] ss:$12 sps:$4 sm:$0xff]   ;;  %v1788_v52 = vld [vmem:[#allocation4 + $0x2d4] ss:$12 sps:$4 sm:$0xff]   ;;  %v1786_v53 = vld [vmem:[#allocation4 + $0x2d0] ss:$12 sps:$4 sm:$0xff]  }
  0x39   :  { %983 = vmatpush1.bf16.msra.mxu1 %v1732_v19  ;;  %949 = vmatprep.subr.bf16.mxu0 %v1742_v22  ;;  %v1789_v54 = vld [vmem:[#allocation4 + $0x120] ss:$12 sps:$4 sm:$0xff]   ;;  %v1794_v56 = vld [vmem:[#allocation4 + $0x2bc] ss:$12 sps:$4 sm:$0xff]   ;;  %v1792_v57 = vld [vmem:[#allocation4 + $0x2b8] ss:$12 sps:$4 sm:$0xff]  }
  0x3a   :  { %984 = vmatprep.subr.bf16.mxu1 %v1740_v20  ;;  %v1790_v55 = vld [vmem:[#allocation4 + $0x10c] ss:$12 sps:$4 sm:$0xff]   ;;  %v1795_v58 = vld [vmem:[#allocation4 + $0x108] ss:$12 sps:$4 sm:$0xff]   ;;  %v1800_v60 = vld [vmem:[#allocation4 + $0x2a4] ss:$12 sps:$4 sm:$0xff]  }
  0x3b   :  { %v1796_v59 = vld [vmem:[#allocation4 + $0xf4] ss:$12 sps:$4 sm:$0xff]   ;;  %v1801_v62 = vld [vmem:[#allocation4 + $0xf0] ss:$12 sps:$4 sm:$0xff]   ;;  %v1806_v1 = vld [vmem:[#allocation4 + $0x28c] ss:$12 sps:$4 sm:$0xff]  }
  0x3c   :  { %950 = vmatpush1.bf16.msra.mxu0 %v1747_v25  ;;  %v1798_v61 = vld [vmem:[#allocation4 + $0x2a0] ss:$12 sps:$4 sm:$0xff]   ;;  %v1802_v63 = vld [vmem:[#allocation4 + $0xdc] ss:$12 sps:$4 sm:$0xff]   ;;  %v1807_v3 = vld [vmem:[#allocation4 + $0xd8] ss:$12 sps:$4 sm:$0xff]  }
  0x3d   :  { %985 = vmatpush1.bf16.msra.mxu1 %v1738_v23  ;;  %951 = vmatprep.subr.bf16.mxu0 %v1748_v26  ;;  %v1804_v2 = vld [vmem:[#allocation4 + $0x288] ss:$12 sps:$4 sm:$0xff]   ;;  %v1808_v4 = vld [vmem:[#allocation4 + $0xc4] ss:$12 sps:$4 sm:$0xff]   ;;  %v1813_v7 = vld [vmem:[#allocation4 + $0xc0] ss:$12 sps:$4 sm:$0xff]  }
  0x3e   :  { %986 = vmatprep.subr.bf16.mxu1 %v1746_v24  ;;  %v1812_v5 = vld [vmem:[#allocation4 + $0x274] ss:$12 sps:$4 sm:$0xff]   ;;  %v1810_v6 = vld [vmem:[#allocation4 + $0x270] ss:$12 sps:$4 sm:$0xff]   ;;  %v1814_v10 = vld [vmem:[#allocation4 + $0x258] ss:$12 sps:$4 sm:$0xff]  }
  0x3f   :  { %v1816_v8 = vld [vmem:[#allocation4 + $0x25c] ss:$12 sps:$4 sm:$0xff]   ;;  %v1821_v11 = vld [vmem:[#allocation4 + $0x244] ss:$12 sps:$4 sm:$0xff]   ;;  %v1819_v12 = vld [vmem:[#allocation4 + $0x240] ss:$12 sps:$4 sm:$0xff]  }
  0x40   :  { %952 = vmatpush1.bf16.msra.mxu0 %v1753_v29  ;;  %v1817_v9 = vld [vmem:[#allocation4 + $0x170] ss:$12 sps:$4 sm:$0xff]   ;;  %v2044_v15 = vshrl.u32 %v131_v14, 7  ;;  %v115_v17 = vld [vmem:[%s2122_s5] sm:$0xf] }
  0x41   :  { %987 = vmatpush1.bf16.msra.mxu1 %v1744_v27  ;;  %953 = vmatprep.subr.bf16.mxu0 %v1754_v30  ;;  %v1825_v13 = vld [vmem:[#allocation4 + $0x2f0] ss:$12 sps:$4 sm:$0xff]  }
  0x42   :  { %988 = vmatprep.subr.bf16.mxu1 %v1752_v28  ;;  %v133_v16 = vsub.s32 0, %v2044_v15  ;;  %v137_v18 = vsub.s32 1, %v2044_v15  ;;  %v141_v23 = vsub.s32 2, %v2044_v15  ;;  %v145_v26 = vsub.s32 3, %v2044_v15  ;;  %v1854_v14 = vld [vmem:[#allocation6 + $0xc0] ss:$16 sps:$4 sm:$0xff]  }
  0x44   :  { %954 = vmatpush1.bf16.msra.mxu0 %v1759_v33  ;;  %v134_v19 = vrot.slane %v115_v17, %v133_v16  ;;  %v138_v20 = vrot.slane %v115_v17, %v137_v18  ;;  %v142_v28 = vrot.slane %v115_v17, %v141_v23  ;;  %v146_v30 = vrot.slane %v115_v17, %v145_v26  ;;  %v1857_v17 = vld [vmem:[#allocation4 + $0x188] ss:$12 sps:$4 sm:$0xff]  }
  0x45   :  { %989 = vmatpush1.bf16.msra.mxu1 %v1750_v31  ;;  %955 = vmatprep.subr.bf16.mxu0 %v1760_v34  ;;  %v1877_v26 = vld [vmem:[#allocation6 + $0xc8] ss:$16 sps:$4 sm:$0xff]  }
  0x46   :  { %990 = vmatprep.subr.bf16.mxu1 %v1758_v32 }
  0x48   :  { %956 = vmatpush1.bf16.msra.mxu0 %v1765_v37 }
  0x49   :  { %991 = vmatpush1.bf16.msra.mxu1 %v1756_v35  ;;  %957 = vmatprep.subr.bf16.mxu0 %v1766_v38 }
  0x4a   :  { %992 = vmatprep.subr.bf16.mxu1 %v1764_v36 }
  0x4c   :  { %958 = vmatpush2.bf16.msra.mxu0 %v1771_v41 }
  0x4d   :  { %993 = vmatpush1.bf16.msra.mxu1 %v1762_v39  ;;  %959 = vmatprep.subr.bf16.mxu0 %v1772_v42  ;;  %v1822_v42 = vld [vmem:[#allocation4 + $0x158] ss:$12 sps:$4 sm:$0xff]  }
  0x4e   :  { %994 = vmatprep.subr.bf16.mxu1 %v1770_v40  ;;  %v1818_v40 = vld [vmem:[#allocation4 + $0xb0] ss:$12 sps:$4 sm:$0xff]  }
  0x50   :  { %960 = vmatpush2.bf16.msra.mxu0 %v1777_v45  ;;  %v1824_v45 = vld [vmem:[#allocation4 + $0x140] ss:$12 sps:$4 sm:$0xff]  }
  0x51   :  { %995 = vmatpush1.bf16.msra.mxu1 %v1768_v43  ;;  %961 = vmatprep.subr.bf16.mxu0 %v1778_v46  ;;  %v1823_v43 = vld [vmem:[#allocation4 + $0x98] ss:$12 sps:$4 sm:$0xff]  }
  0x52   :  { %996 = vmatprep.subr.bf16.mxu1 %v1776_v44 }
  0x54   :  { %962 = vmatpush2.bf16.msra.mxu0 %v1783_v49  ;;  %v1826_v49 = vld [vmem:[#allocation4 + $0x80] ss:$12 sps:$4 sm:$0xff]  }
  0x55   :  { %997 = vmatpush1.bf16.msra.mxu1 %v1774_v47  ;;  %963 = vmatprep.subr.bf16.mxu0 %v1784_v51  ;;  %v1828_v51 = vld [vmem:[#allocation4 + $0x128] ss:$12 sps:$4 sm:$0xff]  }
  0x56   :  { %998 = vmatprep.subr.bf16.mxu1 %v1782_v48 }
  0x58   :  { %964 = vmatpush2.bf16.msra.mxu0 %v1789_v54  ;;  %v1831_v54 = vld [vmem:[#allocation4 + $0x218] ss:$12 sps:$4 sm:$0xff]  }
  0x59   :  { %999 = vmatpush2.bf16.msra.mxu1 %v1780_v50  ;;  %965 = vmatprep.subr.bf16.mxu0 %v1790_v55  ;;  %v1827_v50 = vld [vmem:[#allocation4 + $0x230] ss:$12 sps:$4 sm:$0xff]  }
  0x5a   :  { %1000 = vmatprep.subr.bf16.mxu1 %v1788_v52  ;;  %v1829_v52 = vld [vmem:[#allocation4 + $0x2d8] ss:$12 sps:$4 sm:$0xff]   ;;  %v1832_v55 = vld [vmem:[#allocation4 + $0x110] ss:$12 sps:$4 sm:$0xff]  }
  0x5c   :  { %966 = vmatpush2.bf16.msra.mxu0 %v1795_v58  ;;  %v1835_v58 = vld [vmem:[#allocation4 + $0x200] ss:$12 sps:$4 sm:$0xff]  }
  0x5d   :  { %1001 = vmatpush2.bf16.msra.mxu1 %v1786_v53  ;;  %967 = vmatprep.subr.bf16.mxu0 %v1796_v59  ;;  %v1830_v53 = vld [vmem:[#allocation4 + $0x68] ss:$12 sps:$4 sm:$0xff]   ;;  %v1836_v59 = vld [vmem:[#allocation4 + $0xf8] ss:$12 sps:$4 sm:$0xff]  }
  0x5e   :  { %1002 = vmatprep.subr.bf16.mxu1 %v1794_v56  ;;  %v1833_v56 = vld [vmem:[#allocation4 + $0x2c0] ss:$12 sps:$4 sm:$0xff]  }
  0x60   :  { %968 = vmatpush2.bf16.msra.mxu0 %v1801_v62  ;;  %v1839_v62 = vld [vmem:[#allocation4 + $0x1e8] ss:$12 sps:$4 sm:$0xff]  }
  0x61   :  { %1003 = vmatpush2.bf16.msra.mxu1 %v1792_v57  ;;  %969 = vmatprep.subr.bf16.mxu0 %v1802_v63  ;;  %v1834_v57 = vld [vmem:[#allocation4 + $0x50] ss:$12 sps:$4 sm:$0xff]   ;;  %v1840_v63 = vld [vmem:[#allocation4 + $0xe0] ss:$12 sps:$4 sm:$0xff]  }
  0x62   :  { %1004 = vmatprep.subr.bf16.mxu1 %v1800_v60  ;;  %v1837_v60 = vld [vmem:[#allocation4 + $0x2a8] ss:$12 sps:$4 sm:$0xff]  }
  0x64   :  { %970 = vmatpush2.bf16.msra.mxu0 %v1807_v3  ;;  %v1843_v3 = vld [vmem:[#allocation4 + $0x1d0] ss:$12 sps:$4 sm:$0xff]  }
  0x65   :  { %1005 = vmatpush2.bf16.msra.mxu1 %v1798_v61  ;;  %971 = vmatprep.subr.bf16.mxu0 %v1808_v4  ;;  %v1838_v61 = vld [vmem:[#allocation4 + $0x38] ss:$12 sps:$4 sm:$0xff]   ;;  %v1844_v4 = vld [vmem:[#allocation4 + $0xc8] ss:$12 sps:$4 sm:$0xff]  }
  0x66   :  { %1006 = vmatprep.subr.bf16.mxu1 %v1806_v1  ;;  %v1841_v1 = vld [vmem:[#allocation4 + $0x290] ss:$12 sps:$4 sm:$0xff]  }
  0x68   :  { %972 = vmatpush2.bf16.msra.mxu0 %v1813_v7  ;;  %v1847_v7 = vld [vmem:[#allocation4 + $0x1b8] ss:$12 sps:$4 sm:$0xff]  }
  0x69   :  { %1007 = vmatpush2.bf16.msra.mxu1 %v1804_v2  ;;  %1600 = vmatprep.subr.bf16.mxu0 %v1817_v9  ;;  %v1842_v2 = vld [vmem:[#allocation4 + $0x20] ss:$12 sps:$4 sm:$0xff]   ;;  %v1851_v9 = vld [vmem:[#allocation6 + $0xe4] ss:$16 sps:$4 sm:$0xff]  }
  0x6a   :  { %1008 = vmatprep.subr.bf16.mxu1 %v1812_v5  ;;  %v1845_v5 = vld [vmem:[#allocation4 + $0x278] ss:$12 sps:$4 sm:$0xff]  }
  0x6d   :  { %1009 = vmatpush2.bf16.msra.mxu1 %v1810_v6  ;;  %v1846_v6 = vld [vmem:[#allocation4 + $0x8] ss:$12 sps:$4 sm:$0xff]  }
  0x6e   :  { %1010 = vmatprep.subr.bf16.mxu1 %v1816_v8  ;;  %v1848_v8 = vld [vmem:[#allocation4 + $0x260] ss:$12 sps:$4 sm:$0xff]  }
  0x71   :  { %1011 = vmatpush2.bf16.msra.mxu1 %v1814_v10  ;;  %v1849_v10 = vld [vmem:[#allocation6 + $0xe0] ss:$16 sps:$4 sm:$0xff]  }
  0x72   :  { %1012 = vmatprep.subr.bf16.mxu1 %v1821_v11  ;;  %v1852_v11 = vld [vmem:[#allocation4 + $0x1a0] ss:$12 sps:$4 sm:$0xff]  }
  0x75   :  { %1013 = vmatpush2.bf16.msra.mxu1 %v1819_v12  ;;  %v1853_v12 = vld [vmem:[#allocation4 + $0x248] ss:$12 sps:$4 sm:$0xff]  }
  0x76   :  { %1622 = vmatprep.subr.bf16.mxu1 %v1825_v13  ;;  %v1856_v13 = vld [vmem:[#allocation6 + $0xc4] ss:$16 sps:$4 sm:$0xff]  }
  0xf0   :  { %v229_v21 = vpop.f32.mrf.mxu1 }
  0xf1   :  { %v230_v22 = vadd.f32 %v229_v21, %v134_v19  ;;  %v1860_v19 = vld [vmem:[#allocation6 + $0xa4] ss:$16 sps:$4 sm:$0xff]   ;;  %v1873_v21 = vld [vmem:[#allocation6 + $0xe8] ss:$16 sps:$4 sm:$0xff]  }
  0xf2   :  { %v231_v24 = vpop.f32.mrf.mxu1 }
  0xf3   :  { %v232_v25 = vadd.f32 %v231_v24, %v138_v20  ;;  %1892 = vtanh.f32 %v230_v22  ;;  %v1858_v20 = vld [vmem:[#allocation6 + $0xa0] ss:$16 sps:$4 sm:$0xff]   ;;  %v1863_v22 = vld [vmem:[#allocation6 + $0x84] ss:$16 sps:$4 sm:$0xff]   ;;  %v1986_v24 = vmov 0.0  }
  0xf4   :  { %v233_v27 = vpop.f32.mrf.mxu1 }
  0xf5   :  { %1894 = vtanh.f32 %v232_v25  ;;  %v1861_v25 = vld [vmem:[#allocation6 + $0x80] ss:$16 sps:$4 sm:$0xff]   ;;  %v1866_v27 = vld [vmem:[#allocation6 + $0x64] ss:$16 sps:$4 sm:$0xff]  }
  0xf6   :  { %v234_v29 = vpop.f32.mrf.mxu1 }
  0xf7   :  { %v1869_v29 = vld [vmem:[#allocation6 + $0x44] ss:$16 sps:$4 sm:$0xff]  }
  0xf8   :  { %v270_v31 = vpop.f32.mrf.mxu1 }
  0xf9   :  { %v271_v32 = vadd.f32 %v270_v31, %v142_v28  ;;  %v1878_v28 = vld [vmem:[#allocation6 + $0xa8] ss:$16 sps:$4 sm:$0xff]  }
  0xfa   :  { %v272_v33 = vpop.f32.mrf.mxu1  ;;  %v1879_v31 = vld [vmem:[#allocation6 + $0x88] ss:$16 sps:$4 sm:$0xff]  }
  0xfb   :  { %1896 = vtanh.f32 %v271_v32  ;;  %v273_v34 = vadd.f32 %v272_v33, %v146_v30  ;;  %v1867_v30 = vld [vmem:[#allocation6 + $0x40] ss:$16 sps:$4 sm:$0xff]   ;;  %v1872_v32 = vld [vmem:[#allocation6 + $0x24] ss:$16 sps:$4 sm:$0xff]  }
  0xfc   :  { %v274_v35 = vpop.f32.mrf.mxu1  ;;  %v1870_v33 = vld [vmem:[#allocation6 + $0x20] ss:$16 sps:$4 sm:$0xff]  }
  0xfd   :  { %1898 = vtanh.f32 %v273_v34  ;;  %v1880_v34 = vld [vmem:[#allocation6 + $0x68] ss:$16 sps:$4 sm:$0xff]   ;;  %v1876_v35 = vld [vmem:[#allocation6 + $0x4] ss:$16 sps:$4 sm:$0xff]  }
  0xfe   :  { %v275_v36 = vpop.f32.mrf.mxu1 }
  0xff   :  { %v1874_v36 = vld [vmem:[#allocation6] ss:$16 sps:$4 sm:$0xff]  }
 0x100   :  { %v1893_v37 = vpop.eup %1892 }
 0x101   :  { %v2059_v41 = vpack.c.bf16 %v1893_v37, %v1893_v37  ;;  %v2078_v37 = vld [vmem:[%s2118_s1] sm:$0xff] }
 0x102   :  { %v1895_v38 = vpop.eup %1894 }
 0x103   :  { %v282_v39 = vpack.c.bf16 %v1895_v38, %v1895_v38  ;;  %v1881_v38 = vld [vmem:[#allocation6 + $0x48] ss:$16 sps:$4 sm:$0xff]  }
 0x105   :  { %973 = vmatprep.mubr.bf16.mxu0 %v282_v39 }
 0x106   :  { %974 = vmatmul.mubr.bf16.vlgmr.msra.gmra.mxu0 %v2059_v41 }
 0x107   :  { %1601 = vmatpush3.bf16.msra.mxu0 %v1818_v40  ;;  %1055 = vmatprep.mubr.bf16.mxu0 %v282_v39  ;;  %v1103_v39 = vpack.c.bf16 %v2078_v37, %v2078_v37  ;;  %v1882_v40 = vld [vmem:[#allocation6 + $0x28] ss:$16 sps:$4 sm:$0xff]  }
 0x108   :  { %v1897_v44 = vpop.eup %1896  ;;  %1602 = vmatprep.subr.bf16.mxu0 %v1822_v42  ;;  %v1884_v42 = vld [vmem:[#allocation6 + $0xec] ss:$16 sps:$4 sm:$0xff]  }
 0x109   :  { %v2062_v47 = vpack.c.bf16 %v1897_v44, %v1897_v44  ;;  %v1886_v44 = vld [vmem:[#allocation6 + $0xac] ss:$16 sps:$4 sm:$0xff]  }
 0x10a   :  { %v1899_v46 = vpop.eup %1898 }
 0x10b   :  { %1603 = vmatpush3.bf16.msra.mxu0 %v1823_v43  ;;  %v284_v48 = vpack.c.bf16 %v1899_v46, %v1899_v46  ;;  %v1885_v43 = vld [vmem:[#allocation6 + $0xcc] ss:$16 sps:$4 sm:$0xff]  }
 0x10c   :  { %1604 = vmatprep.subr.bf16.mxu0 %v1824_v45  ;;  %v1887_v45 = vld [vmem:[#allocation6 + $0x8c] ss:$16 sps:$4 sm:$0xff]  }
 0x10d   :  { %1014 = vmatprep.mubr.bf16.mxu1 %v284_v48  ;;  %v1888_v46 = vld [vmem:[#allocation6 + $0x6c] ss:$16 sps:$4 sm:$0xff]  }
 0x10e   :  { %1015 = vmatmul.mubr.bf16.vlgmr.msra.gmra.mxu1 %v2062_v47 }
 0x10f   :  { %1605 = vmatpush3.bf16.msra.mxu0 %v1826_v49  ;;  %1623 = vmatpush3.bf16.msra.mxu1 %v1827_v50  ;;  %v1891_v49 = vld [vmem:[#allocation6 + $0xc] ss:$16 sps:$4 sm:$0xff]  }
 0x110   :  { %1606 = vmatprep.subr.bf16.mxu0 %v1828_v51  ;;  %1624 = vmatprep.subr.bf16.mxu1 %v1829_v52  ;;  %v116_v52 = vld [vmem:[%s2122_s5 + $0x4] sm:$0x7] }
 0x111   :  { %1095 = vmatprep.mubr.bf16.mxu1 %v284_v48  ;;  %v1890_v48 = vld [vmem:[#allocation6 + $0x2c] ss:$16 sps:$4 sm:$0xff]  }
 0x113   :  { %1607 = vmatpush3.bf16.msra.mxu0 %v1830_v53  ;;  %1625 = vmatpush3.bf16.msra.mxu1 %v1831_v54  ;;  %v421_v54 = vrot.slane %v116_v52, %v137_v18 }
 0x114   :  { %1608 = vmatprep.subr.bf16.mxu0 %v1832_v55  ;;  %1626 = vmatprep.subr.bf16.mxu1 %v1833_v56 }
 0x117   :  { %1609 = vmatpush3.bf16.msra.mxu0 %v1834_v57  ;;  %1627 = vmatpush3.bf16.msra.mxu1 %v1835_v58 }
 0x118   :  { %1610 = vmatprep.subr.bf16.mxu0 %v1836_v59  ;;  %1628 = vmatprep.subr.bf16.mxu1 %v1837_v60 }
 0x11b   :  { %1611 = vmatpush3.bf16.msra.mxu0 %v1838_v61  ;;  %1629 = vmatpush3.bf16.msra.mxu1 %v1839_v62 }
 0x11c   :  { %1612 = vmatprep.subr.bf16.mxu0 %v1840_v63  ;;  %1630 = vmatprep.subr.bf16.mxu1 %v1841_v1 }
 0x11f   :  { %1613 = vmatpush3.bf16.msra.mxu0 %v1842_v2  ;;  %1631 = vmatpush3.bf16.msra.mxu1 %v1843_v3 }
 0x120   :  { %1614 = vmatprep.subr.bf16.mxu0 %v1844_v4  ;;  %1632 = vmatprep.subr.bf16.mxu1 %v1845_v5 }
 0x123   :  { %1615 = vmatpush3.bf16.msra.mxu0 %v1846_v6  ;;  %1633 = vmatpush3.bf16.msra.mxu1 %v1847_v7  ;;  %v417_v7 = vrot.slane %v116_v52, %v133_v16 }
 0x124   :  { %1634 = vmatprep.subr.bf16.mxu1 %v1848_v8  ;;  %1232 = vmatprep.subr.bf16.mxu0 %v1851_v9 }
 0x126   :  { %1056 = vmatmul.mubr.bf16.vlgmr.msra.gmra.mxu0 %v2059_v41  ;;  %v1883_v41 = vld [vmem:[#allocation6 + $0x8] ss:$16 sps:$4 sm:$0xff]  }
 0x127   :  { %1635 = vmatpush3.bf16.msra.mxu1 %v1852_v11  ;;  %1233 = vmatpush1.bf16.msra.mxu0 %v1849_v10 }
 0x128   :  { %1636 = vmatprep.subr.bf16.mxu1 %v1853_v12  ;;  %1234 = vmatprep.subr.bf16.mxu0 %v1856_v13 }
 0x129   :  { %1264 = vmatprep.mubr.bf16.mxu0 %v1985_v0  ;;  %v1864_v0 = vld [vmem:[#allocation6 + $0x60] ss:$16 sps:$4 sm:$0xff]  }
 0x12b   :  { %1637 = vmatpush3.bf16.msra.mxu1 %v1857_v17  ;;  %1235 = vmatpush1.bf16.msra.mxu0 %v1854_v14 }
 0x12c   :  { %1236 = vmatprep.subr.bf16.mxu0 %v1860_v19  ;;  %1662 = vmatprep.subr.bf16.mxu1 %v1986_v24 }
 0x12e   :  { %1096 = vmatmul.mubr.bf16.vlgmr.msra.gmra.mxu1 %v2062_v47  ;;  %v1889_v47 = vld [vmem:[#allocation6 + $0x4c] ss:$16 sps:$4 sm:$0xff]  }
 0x12f   :  { %1237 = vmatpush1.bf16.msra.mxu0 %v1858_v20  ;;  %1663 = vmatpush3.bf16.msra.mxu1 %v1873_v21 }
 0x130   :  { %1238 = vmatprep.subr.bf16.mxu0 %v1863_v22  ;;  %1664 = vmatprep.subr.bf16.mxu1 %v1986_v24 }
 0x131   :  { %1678 = vmatprep.mubr.msk.bf16.mxu1 %vm1987_vm1, %v1986_v24 }
 0x133   :  { %1239 = vmatpush1.bf16.msra.mxu0 %v1861_v25  ;;  %1665 = vmatpush3.bf16.msra.mxu1 %v1877_v26 }
 0x134   :  { %1240 = vmatprep.subr.bf16.mxu0 %v1866_v27  ;;  %1666 = vmatprep.subr.bf16.mxu1 %v1986_v24  ;;  %v1590_v27 = vld [vmem:[%s2122_s5 + $0x7] ss:$0 sm:$0xff] }
 0x137   :  { %1241 = vmatpush1.bf16.msra.mxu0 %v1864_v0  ;;  %1667 = vmatpush3.bf16.msra.mxu1 %v1878_v28  ;;  %v425_v0 = vrot.slane %v116_v52, %v141_v23  ;;  %v1591_v23 = vld [vmem:[%s2122_s5 + $0x8] ss:$0 sm:$0xff] }
 0x138   :  { %1242 = vmatprep.subr.bf16.mxu0 %v1869_v29  ;;  %1668 = vmatprep.subr.bf16.mxu1 %v1986_v24 }
 0x13b   :  { %1243 = vmatpush1.bf16.msra.mxu0 %v1867_v30  ;;  %1669 = vmatpush3.bf16.msra.mxu1 %v1879_v31 }
 0x13c   :  { %1244 = vmatprep.subr.bf16.mxu0 %v1872_v32  ;;  %1670 = vmatprep.subr.bf16.mxu1 %v1986_v24 }
 0x13f   :  { %1245 = vmatpush1.bf16.msra.mxu0 %v1870_v33  ;;  %1671 = vmatpush3.bf16.msra.mxu1 %v1880_v34 }
 0x140   :  { %1246 = vmatprep.subr.bf16.mxu0 %v1876_v35  ;;  %1672 = vmatprep.subr.bf16.mxu1 %v1986_v24 }
 0x143   :  { %1247 = vmatpush1.bf16.msra.mxu0 %v1874_v36  ;;  %1673 = vmatpush3.bf16.msra.mxu1 %v1881_v38 }
 0x144   :  { %1674 = vmatprep.subr.bf16.mxu1 %v1986_v24  ;;  %1682 = vmatprep.subr.bf16.mxu0 %v1986_v24 }
 0x146   :  { %1265 = vmatmul.mubr.bf16.vlgmr.msra.gmra.mxu0 %v1103_v39 }
 0x147   :  { %1675 = vmatpush3.bf16.msra.mxu1 %v1882_v40  ;;  %1698 = vmatprep.mubr.msk.bf16.mxu0 %vm1987_vm1, %v1986_v24 }
 0x148   :  { %1676 = vmatprep.subr.bf16.mxu1 %v1986_v24  ;;  %1683 = vmatpush3.bf16.msra.mxu0 %v1884_v42 }
 0x149   :  { %1684 = vmatprep.subr.bf16.mxu0 %v1986_v24 }
 0x14b   :  { %1677 = vmatpush3.bf16.msra.mxu1 %v1883_v41 }
 0x14c   :  { %1685 = vmatpush3.bf16.msra.mxu0 %v1885_v43 }
 0x14d   :  { %1686 = vmatprep.subr.bf16.mxu0 %v1986_v24 }
 0x14e   :  { %1679 = vmatmul.mubr.bf16.vlgmr.msra.gmra.mxu1 %v1103_v39 }
 0x150   :  { %1687 = vmatpush3.bf16.msra.mxu0 %v1886_v44 }
 0x151   :  { %1688 = vmatprep.subr.bf16.mxu0 %v1986_v24 }
 0x154   :  { %1689 = vmatpush3.bf16.msra.mxu0 %v1887_v45 }
 0x155   :  { %1690 = vmatprep.subr.bf16.mxu0 %v1986_v24 }
 0x158   :  { %1691 = vmatpush3.bf16.msra.mxu0 %v1888_v46 }
 0x159   :  { %1692 = vmatprep.subr.bf16.mxu0 %v1986_v24 }
 0x15c   :  { %1693 = vmatpush3.bf16.msra.mxu0 %v1889_v47 }
 0x15d   :  { %1694 = vmatprep.subr.bf16.mxu0 %v1986_v24 }
 0x160   :  { %1695 = vmatpush3.bf16.msra.mxu0 %v1890_v48 }
 0x161   :  { %1696 = vmatprep.subr.bf16.mxu0 %v1986_v24 }
 0x164   :  { %1697 = vmatpush3.bf16.msra.mxu0 %v1891_v49 }
 0x1c6   :  { %v975_v50 = vpop.f32.mrf.mxu0 }
 0x1c7   :  { %v976_v8 = vadd.f32 %v975_v50, %v417_v7 }
 0x1c8   :  { %v977_v51 = vpop.f32.mrf.mxu0 }
 0x1c9   :  { %v978_v57 = vadd.f32 %v977_v51, %v421_v54 }
 0x1ca   :  { %v979_v53 = vpop.f32.mrf.mxu0 }
 0x1cc   :  { %v980_v55 = vpop.f32.mrf.mxu0 }
 0x1ce   :  { %v1016_v56 = vpop.f32.mrf.mxu1 }
 0x1cf   :  { %v1017_v18 = vadd.f32 %v1016_v56, %v976_v8 }
 0x1d0   :  { %v1018_v58 = vpop.f32.mrf.mxu1 }
 0x1d1   :  { %v1019_v59 = vadd.f32 %v1018_v58, %v978_v57 }
 0x1d2   :  { %v1020_v60 = vpop.f32.mrf.mxu1 }
 0x1d4   :  { %v1021_v61 = vpop.f32.mrf.mxu1 }
 0x1e6   :  { %v1616_v62 = vpop.f32.mrf.mxu0 }
 0x1e8   :  { %v1617_v63 = vpop.f32.mrf.mxu0 }
 0x1e9   :  { %v1618_v28 = vadd.f32 %v1617_v63, %v1616_v62 }
 0x1ea   :  { %v1619_v1 = vpop.f32.mrf.mxu0 }
 0x1eb   :  { %v1058_v32 = vadd.f32 %v1618_v28, %v425_v0 }
 0x1ec   :  { %v1620_v2 = vpop.f32.mrf.mxu0 }
 0x1ee   :  { %v1638_v3 = vpop.f32.mrf.mxu1 }
 0x1f0   :  { %v1639_v4 = vpop.f32.mrf.mxu1 }
 0x1f1   :  { %v1640_v29 = vadd.f32 %v1639_v4, %v1638_v3 }
 0x1f2   :  { %v1641_v5 = vpop.f32.mrf.mxu1 }
 0x1f3   :  { %v1098_v34 = vadd.f32 %v1640_v29, %v1058_v32 }
 0x1f4   :  { %v1642_v6 = vpop.f32.mrf.mxu1 }
 0x206   :  { %v1266_v9 = vpop.f32.mrf.mxu0 }
 0x207   :  { %v1313_v10 = vadd.f32 %v1266_v9, %v1017_v18 }
 0x208   :  { %v1268_v11 = vpop.f32.mrf.mxu0 }
 0x209   :  { %v1588_v12 = vmul.f32 -1.442695, %v1313_v10  ;;  %v1320_v17 = vadd.f32 %v1268_v11, %v1019_v59 }
 0x20a   :  { %v1270_v13 = vpop.f32.mrf.mxu0 }
 0x20b   :  { %1900 = vpow2.f32 %v1588_v12  ;;  %v1589_v21 = vmul.f32 -1.442695, %v1320_v17 }
 0x20c   :  { %v1271_v14 = vpop.f32.mrf.mxu0 }
 0x20d   :  { %1902 = vpow2.f32 %v1589_v21 }
 0x20e   :  { %v1307_v19 = vpop.f32.mrf.mxu1 }
 0x20f   :  { %v1333_v31 = vadd.f32 %v1590_v27, %v1307_v19 }
 0x210   :  { %v1680_v20 = vpop.f32.mrf.mxu1 }
 0x212   :  { %v1310_v22 = vpop.f32.mrf.mxu1 }
 0x214   :  { %v1681_v24 = vpop.f32.mrf.mxu1 }
 0x218   :  { %v1901_v25 = vpop.eup %1900 }
 0x219   :  { %v1317_v26 = vadd.f32 1.0, %v1901_v25 }
 0x21a   :  { %v1903_v16 = vpop.eup %1902 }
 0x21b   :  { %1904 = vrcp.f32 %v1317_v26  ;;  %v1324_v30 = vadd.f32 1.0, %v1903_v16 }
 0x21d   :  { %1906 = vrcp.f32 %v1324_v30 }
 0x228   :  { %v1905_v33 = vpop.eup %1904 }
 0x229   :  { %v1334_v35 = vmul.f32 %v1905_v33, %v1333_v31 }
 0x22a   :  { %v1907_v38 = vpop.eup %1906 }
 0x22b   :  { %v1335_v36 = vadd.f32 %v1334_v35, %v1098_v34  ;;  %v1337_v39 = vsub.f32 1.0, %v1907_v38  ;;  %v1339_v42 = vmul.f32 %v1907_v38, %v2078_v37 }
 0x22d   :  { %1908 = vtanh.f32 %v1335_v36 }
 0x23a   :  { %v1909_v40 = vpop.eup %1908 }
 0x23b   :  { %v1338_v41 = vmul.f32 %v1909_v40, %v1337_v39 }
 0x23d   :  { %v1340_v43 = vadd.f32 %v1339_v42, %v1338_v41 }
 0x23f   :  { %v1341_v15 = vpack.c.bf16 %v1340_v43, %v1340_v43  ;;  %1447 = vst [vmem:[%s2124_s7] sm:$0xff] %v1340_v43 }
 0x241   :  { %1699 = vmatmul.mubr.bf16.vlgmr.msra.gmra.mxu0 %v1341_v15 }
 0x301   :  { %v1430_v44 = vpop.f32.mrf.mxu0 }
 0x302   :  { %v1431_v45 = vadd.f32 %v1591_v23, %v1430_v44 }
 0x303   :  { %v1700_v46 = vpop.f32.mrf.mxu0 }
 0x304   :  { %v1436_v47 = vmul.f32 0.1, %v1431_v45 }
 0x305   :  { %v1433_v48 = vpop.f32.mrf.mxu0 }
 0x306   :  { %1437 = vmax.xlane.f32.xlu0 %v1436_v47 }
 0x307   :  { %v1701_v49 = vpop.f32.mrf.mxu0 }
 0x38f   :  { %v1438_v50 = vpop.xlane.xlu0 %1437 }
 0x390   :  { %v1439_v37 = vsub.f32 %v1436_v47, %v1438_v50 }
 0x392   :  { %v1440_v51 = vmul.f32 1.442695, %v1439_v37 }
 0x394   :  { %1910 = vpow2.f32 %v1440_v51 }
 0x3a1   :  { %v1911_v52 = vpop.eup %1910 }
 0x3a2   :  { %1442 = vadd.xlane.f32.xlu0 %v1911_v52 }
 0x42b   :  { %v1443_v53 = vpop.xlane.xlu0 %1442 }
 0x42c   :  { %1912 = vrcp.f32 %v1443_v53 }
 0x439   :  { %v1913_v54 = vpop.eup %1912 }
 0x43a   :  { %v1445_v55 = vmul.f32 %v1913_v54, %v1911_v52 }
 0x43c   :  { %1446 = vst [vmem:[%s2123_s6] sm:$0xff] %v1445_v55 }
 0x43d   :  { %1456 = vsyncpa [#allocation3], 1 }
 0x43e   :  { %1457 = vsyncpa [#allocation5], 1 }

</bundles_post_ra>
